<compile_context>
chip_gen: v5e
topology: v5e:2x2
jax: 0.10.0
libtpu: 0.0.40
codegen_flags: <defaults>
</compile_context>

<pallas_src>
import functools
import math

import jax
import jax.numpy as jnp
from jax import lax
from jax.experimental import pallas as pl
from jax.experimental.pallas import tpu as pltpu


def _round_up(v, m):
    return (v + m - 1) // m * m


def _kdop_kernel(a_ref, b_ref, x_ref, o_ref, *, num_planes):
    # a_ref: (P_pad, D) resident, b_ref: (P_pad, 1) f32 resident,
    # x_ref: (TM, D) row tile of x, o_ref: (1, TM) lane-dense output row.
    #
    # A(P,D) . x(TM,D)^T on the MXU -> (P_pad, TM): batch sits on lanes, so
    # every grid step produces a dense full-lane-width result.  Mosaic inserts
    # the in-VMEM layout transpose for the x operand (XLU, hidden under DMA).
    ax = lax.dot_general(
        a_ref[...], x_ref[...],
        dimension_numbers=(((1,), (1,)), ((), ())),
        preferred_element_type=jnp.float32,
    )
    ax = ax + b_ref[...]                      # bias broadcast over lanes
    s = jax.nn.sigmoid(ax)                    # (P_pad, TM) f32; EUP work

    # Neutralize padded planes (rows >= num_planes) with an iota mask so they
    # contribute exactly 1.0 to the product (robust vs. the sigmoid(30) trick).
    if num_planes < s.shape[0]:
        plane_id = lax.broadcasted_iota(jnp.int32, s.shape, 0)
        s = jnp.where(plane_id < num_planes, s, 1.0)

    # Product over the plane (sublane) axis with plain multiplies:
    #   1) vreg-aligned slice halving down to 8 sublanes (VPU),
    #   2) sublane-rotation butterfly on the XLU (free slot).
    p = s
    rows = p.shape[0]
    while rows > 8:
        half = rows // 2                      # multiple of 8 by construction
        p = p[:half] * p[half:rows]
        rows = half
    p = p * pltpu.roll(p, 4, axis=0)
    p = p * pltpu.roll(p, 2, axis=0)
    p = p * pltpu.roll(p, 1, axis=0)          # every sublane holds the product
    o_ref[...] = p[0:1, :].astype(o_ref.dtype)


def ours_kdop_forward(x, A, bias, *, tm=None, tile_bytes=512 * 1024):
    """Pallas implementation of OursKDOP.forward.

    x: (N, input_dim), A: (num_planes, input_dim), bias: (num_planes,)
    returns: (N, 1) float32 == prod_j sigmoid(x @ A.T + bias)_j.

    x is consumed in its native dtype; pass bfloat16 activations to halve the
    dominant HBM stream (the matmul always accumulates in f32 and the
    sigmoid / product run in f32 regardless).
    """
    N, D = x.shape
    P = A.shape[0]

    A = A.astype(x.dtype)                     # tiny & resident; match MXU dtypes
    bias = bias.astype(jnp.float32)

    # --- pad planes to 8 * 2^k (zero rows; masked to 1.0 inside the kernel) --
    P_pad = max(8, 1 << max(P - 1, 0).bit_length())
    if P_pad != P:
        A = jnp.concatenate([A, jnp.zeros((P_pad - P, D), A.dtype)], axis=0)
        bias = jnp.concatenate(
            [bias, jnp.zeros((P_pad - P,), bias.dtype)], axis=0)
    b2d = bias.reshape(P_pad, 1)

    # --- batch tile (lane axis of the kernel output): multiple of 128 --------
    itemsize = jnp.dtype(x.dtype).itemsize
    if tm is None:
        # Size TM so each x DMA is ~tile_bytes, capped so the (P_pad, TM) f32
        # intermediates stay far below every generation's scoped-VMEM limit.
        tm = max(128, tile_bytes // max(D * itemsize, 1))
        tm = min(tm, max(128, (8 << 20) // (24 * P_pad)))
        tm = min(tm, 8192)
    tm_eff = max(128, min(_round_up(tm, 128), _round_up(N, 128)))
    # v7x has 2 TensorCores: make sure a one-tile problem still yields >= 2
    # parallel grid steps (costs ~0.35us of extra step overhead on 1-TC chips).
    if N >= 256 and tm_eff >= _round_up(N, 128):
        tm_eff = min(tm_eff, _round_up((N + 1) // 2, 128))

    n_blocks = pl.cdiv(N, tm_eff)             # ragged last tile, no jnp.pad
    n_out = n_blocks * tm_eff

    kernel = functools.partial(_kdop_kernel, num_planes=P)

    out = pl.pallas_call(
        kernel,
        out_shape=jax.ShapeDtypeStruct((1, n_out), jnp.float32),
        grid_spec=pltpu.PrefetchScalarGridSpec(
            num_scalar_prefetch=0,
            grid=(n_blocks,),
            in_specs=[
                pl.BlockSpec((P_pad, D), lambda i: (0, 0)),    # A     (resident)
                pl.BlockSpec((P_pad, 1), lambda i: (0, 0)),    # bias  (resident)
                pl.BlockSpec((tm_eff, D), lambda i: (i, 0)),   # x row tile
            ],
            out_specs=pl.BlockSpec((1, tm_eff), lambda i: (0, i)),
        ),
        compiler_params=pltpu.CompilerParams(
            dimension_semantics=("parallel",),  # shards grid across TCs on v7x
        ),
        cost_estimate=pl.CostEstimate(
            flops=2 * N * P * D,
            transcendentals=N * P,
            bytes_accessed=N * D * itemsize + P * D * itemsize + P * 4 + N * 4,
        ),
    )(A, b2d, x)

    return out.reshape(n_out, 1)[:N]


def _reference(x, A, bias):
    ax = x.astype(jnp.float32) @ A.astype(jnp.float32).T + bias.astype(jnp.float32)
    return jnp.prod(jax.nn.sigmoid(ax), axis=1, keepdims=True)


if __name__ == "__main__":
    batch, input_dim, num_planes = 16, 32, 16

    key = jax.random.PRNGKey(0)
    kx, ka, kb, kx2, kx3, ka4, kb4 = jax.random.split(key, 7)

    # Deterministic parameter init mirroring the PyTorch module:
    #   kaiming_uniform_(A, a=sqrt(5)) -> U(-1/sqrt(fan_in), 1/sqrt(fan_in))
    #   uniform_(bias, -0.5, 0.5)
    bound = 1.0 / math.sqrt(input_dim)
    A = jax.random.uniform(
        ka, (num_planes, input_dim), jnp.float32, minval=-bound, maxval=bound)
    bias = jax.random.uniform(
        kb, (num_planes,), jnp.float32, minval=-0.5, maxval=0.5)

    # 1) small f32 batch (single grid step, block larger than the batch).
    x = jax.random.normal(kx, (batch, input_dim), jnp.float32)
    out = jax.block_until_ready(ours_kdop_forward(x, A, bias))
    ref = _reference(x, A, bias)
    assert out.shape == (batch, 1), out.shape
    assert jnp.allclose(out, ref, rtol=1e-3, atol=1e-6), (
        float(jnp.max(jnp.abs(out - ref))))

    # 2) ragged batch, multi-step grid (>=2-step split + masked last tile).
    x2 = jax.random.normal(kx2, (300, input_dim), jnp.float32)
    out2 = jax.block_until_ready(ours_kdop_forward(x2, A, bias))
    ref2 = _reference(x2, A, bias)
    assert out2.shape == (300, 1), out2.shape
    assert jnp.allclose(out2, ref2, rtol=1e-3, atol=1e-6), (
        float(jnp.max(jnp.abs(out2 - ref2))))

    # 3) bf16 activations (the recommended bandwidth-saving input dtype).
    x3 = jax.random.normal(kx3, (1024, input_dim), jnp.float32)
    x3_bf = x3.astype(jnp.bfloat16)
    out3 = jax.block_until_ready(ours_kdop_forward(x3_bf, A, bias))
    ref3 = _reference(x3_bf.astype(jnp.float32),
                      A.astype(jnp.bfloat16).astype(jnp.float32), bias)
    assert out3.shape == (1024, 1), out3.shape
    assert jnp.allclose(out3, ref3, rtol=3e-2, atol=1e-4), (
        float(jnp.max(jnp.abs(out3 - ref3))))

    # 4) non-power-of-two plane count (exercises plane padding + iota mask).
    A4 = jax.random.uniform(
        ka4, (12, input_dim), jnp.float32, minval=-bound, maxval=bound)
    bias4 = jax.random.uniform(kb4, (12,), jnp.float32, minval=-0.5, maxval=0.5)
    out4 = jax.block_until_ready(ours_kdop_forward(x, A4, bias4))
    ref4 = _reference(x, A4, bias4)
    assert out4.shape == (batch, 1), out4.shape
    assert jnp.allclose(out4, ref4, rtol=1e-3, atol=1e-6), (
        float(jnp.max(jnp.abs(out4 - ref4))))

    print("KERNEL_OK")
</pallas_src>

<mosaic_0001>
module attributes {stable_mosaic.version = 11 : i64} {
  func.func @_kdop_kernel(%arg0: i32, %arg1: memref<16x32xf32, #tpu.memory_space<vmem>>, %arg2: memref<16x1xf32, #tpu.memory_space<vmem>>, %arg3: memref<128x32xf32, #tpu.memory_space<vmem>>, %arg4: memref<1x128xf32, #tpu.memory_space<vmem>>) attributes {dimension_semantics = [#tpu.dimension_semantics<parallel>], iteration_bounds = array<i64: 1>, scalar_prefetch = 0 : i64, scratch_operands = 0 : i64, tpu.core_type = #tpu.core_type<tc>, window_params = [{pipeline_mode = #tpu.pipeline_mode<synchronous>, transform_indices = @transform_0, window_bounds = array<i64: 16, 32>}, {pipeline_mode = #tpu.pipeline_mode<synchronous>, transform_indices = @transform_1, window_bounds = array<i64: 16, 1>}, {transform_indices = @transform_2, window_bounds = array<i64: 128, 32>}, {transform_indices = @transform_3, window_bounds = array<i64: 1, 128>}]} {
    %c0 = arith.constant 0 : index
    %c0_0 = arith.constant 0 : index
    %0 = vector.load %arg1[%c0, %c0_0] : memref<16x32xf32, #tpu.memory_space<vmem>>, vector<16x32xf32>
    %c0_1 = arith.constant 0 : index
    %c0_2 = arith.constant 0 : index
    %1 = vector.load %arg3[%c0_1, %c0_2] : memref<128x32xf32, #tpu.memory_space<vmem>>, vector<128x32xf32>
    %cst = arith.constant dense<0.000000e+00> : vector<16x128xf32>
    %2 = tpu.matmul %0, %1, %cst {dimension_numbers = #tpu.dot_dimension_numbers<[1], [1], [0], [0], [0, 0, 1, 0], [], []>} : vector<16x32xf32>, vector<128x32xf32>, vector<16x128xf32> -> vector<16x128xf32>
    %c0_3 = arith.constant 0 : index
    %c0_4 = arith.constant 0 : index
    %3 = vector.load %arg2[%c0_3, %c0_4] : memref<16x1xf32, #tpu.memory_space<vmem>>, vector<16x1xf32>
    %4 = vector.broadcast %3 : vector<16x1xf32> to vector<16x128xf32>
    %5 = arith.addf %2, %4 : vector<16x128xf32>
    %6 = arith.negf %5 : vector<16x128xf32>
    %7 = math.exp %6 : vector<16x128xf32>
    %cst_5 = arith.constant 1.000000e+00 : f32
    %8 = vector.broadcast %cst_5 : f32 to vector<16x128xf32>
    %9 = arith.addf %8, %7 : vector<16x128xf32>
    %10 = arith.divf %8, %9 : vector<16x128xf32>
    %11 = vector.extract_strided_slice %10 {offsets = [0, 0], sizes = [8, 128], strides = [1, 1]} : vector<16x128xf32> to vector<8x128xf32>
    %12 = vector.extract_strided_slice %10 {offsets = [8, 0], sizes = [8, 128], strides = [1, 1]} : vector<16x128xf32> to vector<8x128xf32>
    %13 = arith.mulf %11, %12 : vector<8x128xf32>
    %c4_i32 = arith.constant 4 : i32
    %14 = tpu.dynamic_rotate %13 by %c4_i32 dim 0 : vector<8x128xf32>, i32 -> vector<8x128xf32>
    %15 = arith.mulf %13, %14 : vector<8x128xf32>
    %c2_i32 = arith.constant 2 : i32
    %16 = tpu.dynamic_rotate %15 by %c2_i32 dim 0 : vector<8x128xf32>, i32 -> vector<8x128xf32>
    %17 = arith.mulf %15, %16 : vector<8x128xf32>
    %c1_i32 = arith.constant 1 : i32
    %18 = tpu.dynamic_rotate %17 by %c1_i32 dim 0 : vector<8x128xf32>, i32 -> vector<8x128xf32>
    %19 = arith.mulf %17, %18 : vector<8x128xf32>
    %20 = vector.extract_strided_slice %19 {offsets = [0, 0], sizes = [1, 128], strides = [1, 1]} : vector<8x128xf32> to vector<1x128xf32>
    %c0_6 = arith.constant 0 : index
    %c0_7 = arith.constant 0 : index
    %21 = vector.load %arg4[%c0_6, %c0_7] : memref<1x128xf32, #tpu.memory_space<vmem>>, vector<1x128xf32>
    tpu.vector_store %arg4[%c0_6, %c0_7], %20 {strides = array<i32>} : memref<1x128xf32, #tpu.memory_space<vmem>>, vector<1x128xf32>,
    return
  }
  func.func @transform_0(%arg0: i32) -> (i32, i32) {
    %c0_i32 = arith.constant 0 : i32
    %c0_i32_0 = arith.constant 0 : i32
    %c0_i32_1 = arith.constant 0 : i32
    return %c0_i32, %c0_i32_0 : i32, i32
  }
  func.func @transform_1(%arg0: i32) -> (i32, i32) {
    %c0_i32 = arith.constant 0 : i32
    %c0_i32_0 = arith.constant 0 : i32
    %c0_i32_1 = arith.constant 0 : i32
    return %c0_i32, %c0_i32_0 : i32, i32
  }
  func.func @transform_2(%arg0: i32) -> (i32, i32) {
    %c0_i32 = arith.constant 0 : i32
    %c0_i32_0 = arith.constant 0 : i32
    return %arg0, %c0_i32 : i32, i32
  }
  func.func @transform_3(%arg0: i32) -> (i32, i32) {
    %c0_i32 = arith.constant 0 : i32
    %c0_i32_0 = arith.constant 0 : i32
    return %c0_i32, %arg0 : i32, i32
  }
}

</mosaic_0001>

<bundles_post_ra>
// kernel: tpu_custom_call.1
= control target key start
LH: loop header
LB: loop body
LE: loop exit
PB: predicated region body
PF: predicated region fallthrough
CT: control target
= control target key end

     0   :  { %8 = vsyncpa [#allocation3], 0  ;;  %s381_s0 = inlined_call_operand.vmem [shape: f32[16,32], index: 0, kind: input, shape index: {}]   ;;  %s382_s1 = inlined_call_operand.vmem [shape: f32[16,1], index: 1, kind: input, shape index: {}]   ;;  %s383_s2 = inlined_call_operand.hbm [shape: f32[16,32], index: 2, kind: input, shape index: {}]   ;;  %s384_s3 = inlined_call_operand.hbm [shape: f32[1,128], index: 3, kind: output, shape index: {}]  }
   0x1   :  { %9 = vsyncpa [#allocation4], 0 }
   0x2   :  { %17 = vsyncadd [#allocation3], 1792  ;;  %s18_s14 = sshll.u32 %s383_s2, 4  ;;  %s304_s15 = smov [#allocation2]   ;;  %s19_s14 = int_to_ptr.hbm [resolvable:$true] %s18_s14 }
   0x3   :  { %s20_s16 = sshll.u32 %s304_s15, 4  ;;  %s305_s17 = smov 128   ;;  %s21_s16 = int_to_ptr.vmem [resolvable:$true] %s20_s16 }
   0x4   :  { %s306_s18 = smov 8  }
   0x5   :  { %26 = dma.hbm_to_vmem [thread:$0]  %s19_s14, 256, %s21_s16, [#allocation3], %s305_s17, %s305_s17, %s306_s18  }
   0x6   :  { %300 = dma.done.wait [#allocation3], 2048  }
   0x7   :  { %301 = vsyncadd [#allocation3], 4294965248  ;;  %vm61_vm0 = vcmask 261120   ;;  %v48_v0 = vld [vmem:[#allocation2 + $0x78] sm:$0xff]  ;;  %v47_v1 = vld [vmem:[#allocation2 + $0x70] sm:$0xff]  ;;  %v307_v9 = vmov 0  }
   0x8   :  { %202 = vmatpush.xpose.msk.msra.mxu0 %vm61_vm0, %v48_v0  ;;  %222 = vmatpush.xpose.msk.msra.mxu1 %vm61_vm0, %v48_v0  ;;  %v46_v2 = vld [vmem:[#allocation2 + $0x68] sm:$0xff]  ;;  %v45_v3 = vld [vmem:[#allocation2 + $0x60] sm:$0xff]  ;;  %v44_v4 = vld [vmem:[#allocation2 + $0x58] sm:$0xff]  ;;  %s192_s28 = sshll.u32 %s384_s3, 4  ;;  %s193_s28 = int_to_ptr.hbm [resolvable:$true] %s192_s28 }
   0x9   :  { %v43_v5 = vld [vmem:[#allocation2 + $0x50] sm:$0xff]  ;;  %v42_v6 = vld [vmem:[#allocation2 + $0x48] sm:$0xff]  ;;  %v49_v7 = vld [vmem:[%s382_s1] sm:$0xff]  ;;  %243 = vset.pattern.permute.xlu0 %v307_v9 }
   0xa   :  { %v41_v8 = vld [vmem:[#allocation2 + $0x40] sm:$0xff]  ;;  %53 = vperm.xlu0 %243, %v49_v7   ;;  %v40_v10 = vld [vmem:[#allocation2 + $0x38] sm:$0xff]  ;;  %v50_v11 = vld [vmem:[%s382_s1 + $0x8] sm:$0xff] }
   0xb   :  { %v39_v12 = vld [vmem:[#allocation2 + $0x30] sm:$0xff]  ;;  %v38_v13 = vld [vmem:[#allocation2 + $0x28] sm:$0xff]  ;;  %v37_v14 = vld [vmem:[#allocation2 + $0x20] sm:$0xff] }
   0xc   :  { %203 = vmatpush.xpose.msk.msra.mxu0 %vm61_vm0, %v47_v1  ;;  %223 = vmatpush.xpose.msk.msra.mxu1 %vm61_vm0, %v47_v1  ;;  %v36_v15 = vld [vmem:[#allocation2 + $0x18] sm:$0xff]  ;;  %v35_v16 = vld [vmem:[#allocation2 + $0x10] sm:$0xff]  ;;  %v34_v17 = vld [vmem:[#allocation2 + $0x8] sm:$0xff] }
   0xd   :  { %v33_v18 = vld [vmem:[#allocation2] sm:$0xff]  ;;  %v32_v20 = vld [vmem:[%s381_s0 + $0x8] sm:$0xff] }
   0xe   :  { %v31_v19 = vld [vmem:[%s381_s0] sm:$0xff]  ;;  %s308_s0 = smov [#allocation5]  }
   0xf   :  { %s190_s25 = sshll.u32 %s308_s0, 4  ;;  %s191_s25 = int_to_ptr.vmem [resolvable:$true] %s190_s25 }
  0x10   :  { %204 = vmatpush.xpose.msk.msra.mxu0 %vm61_vm0, %v46_v2  ;;  %224 = vmatpush.xpose.msk.msra.mxu1 %vm61_vm0, %v46_v2 }
  0x12   :  { %58 = vperm.xlu0 %243, %v50_v11  }
  0x14   :  { %205 = vmatpush.xpose.msk.msra.mxu0 %vm61_vm0, %v45_v3  ;;  %225 = vmatpush.xpose.msk.msra.mxu1 %vm61_vm0, %v45_v3 }
  0x18   :  { %206 = vmatpush.xpose.msk.msra.mxu0 %vm61_vm0, %v44_v4  ;;  %226 = vmatpush.xpose.msk.msra.mxu1 %vm61_vm0, %v44_v4 }
  0x1c   :  { %207 = vmatpush.xpose.msk.msra.mxu0 %vm61_vm0, %v43_v5  ;;  %227 = vmatpush.xpose.msk.msra.mxu1 %vm61_vm0, %v43_v5 }
  0x20   :  { %208 = vmatpush.xpose.msk.msra.mxu0 %vm61_vm0, %v42_v6  ;;  %228 = vmatpush.xpose.msk.msra.mxu1 %vm61_vm0, %v42_v6 }
  0x24   :  { %209 = vmatpush.xpose.msk.msra.mxu0 %vm61_vm0, %v41_v8  ;;  %229 = vmatpush.xpose.msk.msra.mxu1 %vm61_vm0, %v41_v8 }
  0x28   :  { %210 = vmatpush.xpose.msk.msra.mxu0 %vm61_vm0, %v40_v10  ;;  %230 = vmatpush.xpose.msk.msra.mxu1 %vm61_vm0, %v40_v10 }
  0x2c   :  { %211 = vmatpush.xpose.msk.msra.mxu0 %vm61_vm0, %v39_v12  ;;  %231 = vmatpush.xpose.msk.msra.mxu1 %vm61_vm0, %v39_v12 }
  0x30   :  { %212 = vmatpush.xpose.msk.msra.mxu0 %vm61_vm0, %v38_v13  ;;  %232 = vmatpush.xpose.msk.msra.mxu1 %vm61_vm0, %v38_v13 }
  0x34   :  { %213 = vmatpush.xpose.msk.msra.mxu0 %vm61_vm0, %v37_v14  ;;  %233 = vmatpush.xpose.msk.msra.mxu1 %vm61_vm0, %v37_v14 }
  0x38   :  { %214 = vmatpush.xpose.msk.msra.mxu0 %vm61_vm0, %v36_v15  ;;  %234 = vmatpush.xpose.msk.msra.mxu1 %vm61_vm0, %v36_v15 }
  0x3c   :  { %215 = vmatpush.xpose.msk.msra.mxu0 %vm61_vm0, %v35_v16  ;;  %235 = vmatpush.xpose.msk.msra.mxu1 %vm61_vm0, %v35_v16 }
  0x40   :  { %216 = vmatpush.xpose.msk.msra.mxu0 %vm61_vm0, %v34_v17  ;;  %236 = vmatpush.xpose.msk.msra.mxu1 %vm61_vm0, %v34_v17 }
  0x44   :  { %217 = vmatpush.xpose.msk.msra.mxu0 %vm61_vm0, %v33_v18  ;;  %237 = vmatpush.xpose.msk.msra.mxu1 %vm61_vm0, %v33_v18 }
  0x47   :  { %218 = vmatmul.msk.f32.vlgmr.msra.gmra.mxu0 %vm61_vm0, %v31_v19  ;;  %219 = vmatmul.msk.f32.vlgmr.msra.gmra.mxu1 %vm61_vm0, %v32_v20 }
  0x7c   :  { %v54_v21 = vpop.permute.xlu0 %53 }
  0x84   :  { %v59_v22 = vpop.permute.xlu0 %58 }
  0xc4   :  { %v133_v23 = vpop.f32.mrf.mxu0  ;;  %v136_v24 = vpop.f32.mrf.mxu1 }
  0xc5   :  { %v134_v25 = vadd.f32 %v133_v23, %v54_v21  ;;  %v137_v26 = vadd.f32 %v136_v24, %v59_v22 }
  0xc7   :  { %v220_v27 = vmul.f32 -1.442695, %v134_v25  ;;  %v221_v28 = vmul.f32 -1.442695, %v137_v26 }
  0xc9   :  { %244 = vpow2.f32 %v220_v27 }
  0xca   :  { %246 = vpow2.f32 %v221_v28 }
  0xcf   :  { %v245_v29 = vpop.eup %244 }
  0xd0   :  { %v247_v30 = vpop.eup %246  ;;  %v145_v31 = vadd.f32 1.0, %v245_v29 }
  0xd1   :  { %v146_v32 = vadd.f32 1.0, %v247_v30 }
  0xd2   :  { %248 = vrcp.f32 %v145_v31  ;;  %v158_v38 = vand.u32 2147483648, %v145_v31  ;;  %v156_v42 = vand.u32 2147483647, %v145_v31  ;;  %vm152_vm3 = vweird.f32 %v145_v31 }
  0xd3   :  { %250 = vrcp.f32 %v146_v32  ;;  %v173_v41 = vand.u32 2147483648, %v146_v32  ;;  %v171_v44 = vand.u32 2147483647, %v146_v32  ;;  %vm167_vm5 = vweird.f32 %v146_v32 }
  0xd4   :  { %v159_v46 = vor.u32 1.1754944e-38, %v158_v38  ;;  %vm157_vm7 = vcmp.eq.f32.partialorder %v156_v42, 8.507059e+37 }
  0xd5   :  { %v174_v48 = vor.u32 1.1754944e-38, %v173_v41  ;;  %vm172_vm8 = vcmp.eq.f32.partialorder %v171_v44, 8.507059e+37 }
  0xd8   :  { %v249_v33 = vpop.eup %248 }
  0xd9   :  { %v251_v34 = vpop.eup %250  ;;  %v148_v35 = vmul.f32 %v249_v33, %v145_v31  ;;  %vm153_vm1 = vweird.f32 %v249_v33 }
  0xda   :  { %v163_v36 = vmul.f32 %v251_v34, %v146_v32  ;;  %vm168_vm2 = vweird.f32 %v251_v34  ;;  %vm154_vm4 = vmor %vm152_vm3, %vm153_vm1 }
  0xdb   :  { %v149_v37 = vsub.f32 1.0, %v148_v35  ;;  %vm169_vm6 = vmor %vm167_vm5, %vm168_vm2 }
  0xdc   :  { %v164_v39 = vsub.f32 1.0, %v163_v36 }
  0xdd   :  { %v150_v40 = vmul.f32 %v249_v33, %v149_v37 }
  0xde   :  { %v165_v43 = vmul.f32 %v251_v34, %v164_v39 }
  0xdf   :  { %v151_v45 = vadd.f32 %v249_v33, %v150_v40 }
  0xe0   :  { %v166_v47 = vadd.f32 %v251_v34, %v165_v43 }
  0xe1   :  { %v155_v49 = vsel %vm154_vm4, %v249_v33, %v151_v45 }
  0xe2   :  { %v160_v50 = vsel %vm157_vm7, %v159_v46, %v155_v49  ;;  %v170_v51 = vsel %vm169_vm6, %v251_v34, %v166_v47 }
  0xe3   :  { %v175_v52 = vsel %vm172_vm8, %v174_v48, %v170_v51 }
  0xe4   :  { %v177_v53 = vmul.f32 %v175_v52, %v160_v50 }
  0xe6   :  { %v178_v54 = vrot.slane %v177_v53, 4 }
  0xe8   :  { %v179_v55 = vmul.f32 %v178_v54, %v177_v53 }
  0xea   :  { %v180_v56 = vrot.slane %v179_v55, 6 }
  0xec   :  { %v181_v57 = vmul.f32 %v180_v56, %v179_v55 }
  0xee   :  { %v182_v58 = vrot.slane %v181_v57, 7 }
  0xf0   :  { %v183_v59 = vmul.f32 %v182_v58, %v181_v57 }
  0xf2   :  { %184 = vst [vmem:[#allocation5] sm:$0x1] %v183_v59 }
  0xf3   :  { %195 = dma.vmem_to_hbm [thread:$0]  %s191_s25, 16, %s193_s28, [#allocation4]  }
  0xf4   :  { %302 = dma.done.wait [#allocation4], 16  }
  0xf5   :  { %303 = vsyncadd [#allocation4], 4294967280 }
  0xf6   :  { %200 = vsyncpa [#allocation3], 1 }
  0xf7   :  { %201 = vsyncpa [#allocation4], 1 }

</bundles_post_ra>
